<compile_context>
chip_gen: v7x
topology: tpu7x:2x2x1
jax: 0.10.0
libtpu: 0.0.40
codegen_flags: <defaults>
</compile_context>

<pallas_src>
from functools import partial

import jax
import jax.numpy as jnp
from jax.experimental import pallas as pl
from jax.experimental.pallas import tpu as pltpu

N_POINTS = 200  # torch.linspace(self.universe.min, self.universe.max, 200)
LANE = 128


def _round_up(x, m):
    return ((x + m - 1) // m) * m


def _is_v7x():
    """Only v7x has 2 TensorCores; gate the megacore tile split on it."""
    try:
        return "v7" in jax.devices()[0].device_kind.lower()
    except Exception:
        return False


def tsukamoto_kernel(f_ref, rules_ref, func_ref, w_ref, out_ref, *, J, K, tile_m):
    # f_ref:     (J, TM)         firing strengths, flattened (b,i) rows on lanes
    # rules_ref: (K, J*LANE)     rules_ref[:, j*LANE+l] = rules[j, :] (lane pre-broadcast)
    # func_ref:  (N_pad, K*LANE) func_ref[n, k*LANE+l] = mf[k, n]    (lane pre-broadcast)
    # w_ref:     (2, N_pad)      row 0 = X (0 on padded lanes), row 1 = valid-lane mask
    # out_ref:   (1, TM)
    for c in range(tile_m // LANE):
        c0 = c * LANE
        fc = f_ref[:, c0:c0 + LANE]                            # (J, LANE)

        # g[k, m] = max_j f[j, m] * rules[j, k]
        # exact: max_j min(c, a_j) == min(c, max_j a_j)  (applied later)
        g = rules_ref[:, 0:LANE] * fc[0:1, :]                  # (K, LANE)
        for j in range(1, J):
            g = jnp.maximum(g, rules_ref[:, j * LANE:(j + 1) * LANE] * fc[j:j + 1, :])

        # y_max[n, m] = max_k min(mf[k, n], g[k, m])  -- 2K-1 passes over (N_pad, LANE)
        ym = jnp.minimum(func_ref[:, 0:LANE], g[0:1, :])       # (N_pad, LANE)
        for k in range(1, K):
            ym = jnp.maximum(ym,
                             jnp.minimum(func_ref[:, k * LANE:(k + 1) * LANE],
                                         g[k:k + 1, :]))

        # Centroid: numerator and denominator in ONE MXU matmul.
        nd = jnp.dot(w_ref[...], ym,
                     preferred_element_type=jnp.float32,
                     precision=jax.lax.Precision.HIGHEST)      # (2, LANE)
        res = nd[0:1, :] / nd[1:2, :]
        out_ref[:, c0:c0 + LANE] = jnp.where(jnp.isnan(res), jnp.float32(0.0), res)


def tsukamoto_forward(f, rules, func_outputs, x_lin, *, tile_m=512):
    """f: (B, I, J), rules: (J, K), func_outputs: (K, N), x_lin: (N,) -> (B, I, 1) f32."""
    B, I, J = f.shape
    K = rules.shape[1]
    N = x_lin.shape[0]
    M = B * I
    f32 = jnp.float32

    # Rows map to lanes -> pad the flattened row axis to a lane multiple.
    # Padded rows/columns are computed and discarded (per-row independent).
    N_pad = _round_up(N, LANE)
    M_pad = _round_up(M, LANE)

    tile_m = max(LANE, (min(tile_m, M_pad) // LANE) * LANE)
    # v7x only: if a single tile would leave one TensorCore idle, split it.
    if _is_v7x() and _round_up(M_pad, tile_m) // tile_m == 1 and tile_m >= 2 * LANE:
        tile_m //= 2
    M_pad = _round_up(M_pad, tile_m)
    grid_m = M_pad // tile_m
    # VMEM is not the limiter on any generation (resident tables ~0.6 MiB,
    # per-tile f slab = 4*J*tile_m bytes); tile_m is chosen for grid-step
    # amortization with the in-kernel 128-lane chunk loop bounding vreg pressure.

    # f transposed to (J, M_pad): contiguous 4*tile_m-byte DMA segments per row.
    f_t = f.reshape(M, J).astype(f32).T                               # (J, M)
    if M_pad != M:
        f_t = jnp.pad(f_t, ((0, 0), (0, M_pad - M)))

    # Lane pre-broadcast tables (built once, wrapper-side) so the kernel only
    # ever does cheap sublane broadcasts of (1, 128) rows.
    rules_b = jnp.repeat(rules.astype(f32).T[:, :, None], LANE, axis=2) \
                 .reshape(K, J * LANE)                                 # (K, J*LANE)
    func_pad = jnp.pad(func_outputs.astype(f32), ((0, 0), (0, N_pad - N)))  # (K, N_pad)
    func_b = jnp.repeat(func_pad.T[:, :, None], LANE, axis=2) \
                .reshape(N_pad, K * LANE)                              # (N_pad, K*LANE)

    # MXU reduction operand: [X ; valid mask], zero on padded universe lanes.
    x_row = jnp.pad(x_lin.astype(f32), (0, N_pad - N))
    mask_row = jnp.pad(jnp.ones((N,), f32), (0, N_pad - N))
    w = jnp.stack([x_row, mask_row], axis=0)                           # (2, N_pad)

    flops = M_pad * ((2 * J - 1) * K + (2 * K - 1) * N_pad + 4 * N_pad + 3)
    bytes_accessed = 4 * (J * M_pad + M_pad + K * J * LANE + N_pad * K * LANE + 2 * N_pad)
    cost = pl.CostEstimate(flops=flops, transcendentals=0, bytes_accessed=bytes_accessed)

    out = pl.pallas_call(
        partial(tsukamoto_kernel, J=J, K=K, tile_m=tile_m),
        out_shape=jax.ShapeDtypeStruct((1, M_pad), jnp.float32),
        grid_spec=pltpu.PrefetchScalarGridSpec(
            num_scalar_prefetch=0,
            grid=(grid_m,),
            in_specs=[
                pl.BlockSpec((J, tile_m), lambda i: (0, i)),           # f (rows on lanes)
                pl.BlockSpec((K, J * LANE), lambda i: (0, 0)),         # rules (lane-bcast)
                pl.BlockSpec((N_pad, K * LANE), lambda i: (0, 0)),     # mf table (lane-bcast)
                pl.BlockSpec((2, N_pad), lambda i: (0, 0)),            # [X | mask]
            ],
            out_specs=pl.BlockSpec((1, tile_m), lambda i: (0, i)),     # lane-dense output
        ),
        compiler_params=pltpu.CompilerParams(
            dimension_semantics=("parallel",),
        ),
        cost_estimate=cost,
    )(f_t, rules_b, func_b, w)
    return out[0, :M].reshape(B, I, 1)


def reference_forward(f, rules, func_outputs, x_lin):
    """Pure-JAX transcription of the PyTorch forward for validation."""
    fr = jnp.einsum("bij,jk->bijk", f, rules)                               # (B,I,J,K)
    y = jnp.minimum(func_outputs[None, None, None, :, :], fr[..., None])    # (B,I,J,K,N)
    y_max = jnp.max(y, axis=(2, 3))                                         # (B,I,N)
    num = jnp.sum(x_lin * y_max, axis=-1)
    den = jnp.sum(y_max, axis=-1)
    out = num / den
    out = jnp.where(jnp.isnan(out), 0.0, out)
    return out[..., None]


if __name__ == "__main__":
    # Small, deterministic problem: B=2 batches, I=8 sequence rows, J=5 rules,
    # K=4 consequent membership functions, N=200 universe sample points.
    B, I, J, K = 2, 8, 5, 4

    key = jax.random.PRNGKey(0)
    kf, kr = jax.random.split(key)
    f = jax.random.uniform(kf, (B, I, J), dtype=jnp.float32)          # firing strengths
    rules = jax.random.uniform(kr, (J, K), dtype=jnp.float32)         # rule weights

    # Synthetic Universe: range [0, 10], K monotonic Sigmoid output MFs with
    # deterministic parameters (pyanfis loads these from a config dict).
    # TODO(synk): dynamic __import__-based membership-function loading has no
    # Pallas equivalent; MFs are sampled here in plain JAX (glue) and passed as
    # a (K, N) table — min/amax/centroid all run inside the kernel.
    universe_min, universe_max = 0.0, 10.0
    centers = jnp.array([2.0, 4.0, 6.0, 8.0], dtype=jnp.float32)
    slopes = jnp.array([1.5, -1.0, 2.0, -0.75], dtype=jnp.float32)
    x_lin = jnp.linspace(universe_min, universe_max, N_POINTS, dtype=jnp.float32)
    func_outputs = jax.nn.sigmoid(
        slopes[:, None] * (x_lin[None, :] - centers[:, None])
    )  # (K, N)

    out = tsukamoto_forward(f, rules, func_outputs, x_lin)
    out = jax.block_until_ready(out)

    ref = reference_forward(f, rules, func_outputs, x_lin)
    assert out.shape == (B, I, 1), out.shape
    assert jnp.allclose(out, ref, atol=1e-5, rtol=1e-5), (out, ref)

    print("KERNEL_OK")
</pallas_src>

<mosaic_0001>
module attributes {stable_mosaic.version = 11 : i64} {
  func.func @tsukamoto_kernel(%arg0: i32, %arg1: memref<5x128xf32, #tpu.memory_space<vmem>>, %arg2: memref<4x640xf32, #tpu.memory_space<vmem>>, %arg3: memref<256x512xf32, #tpu.memory_space<vmem>>, %arg4: memref<2x256xf32, #tpu.memory_space<vmem>>, %arg5: memref<1x128xf32, #tpu.memory_space<vmem>>) attributes {dimension_semantics = [#tpu.dimension_semantics<parallel>], iteration_bounds = array<i64: 1>, scalar_prefetch = 0 : i64, scratch_operands = 0 : i64, tpu.core_type = #tpu.core_type<tc>, window_params = [{transform_indices = @transform_0, window_bounds = array<i64: 5, 128>}, {pipeline_mode = #tpu.pipeline_mode<synchronous>, transform_indices = @transform_1, window_bounds = array<i64: 4, 640>}, {pipeline_mode = #tpu.pipeline_mode<synchronous>, transform_indices = @transform_2, window_bounds = array<i64: 256, 512>}, {pipeline_mode = #tpu.pipeline_mode<synchronous>, transform_indices = @transform_3, window_bounds = array<i64: 2, 256>}, {transform_indices = @transform_4, window_bounds = array<i64: 1, 128>}]} {
    %c0 = arith.constant 0 : index
    %c0_0 = arith.constant 0 : index
    %0 = vector.load %arg1[%c0, %c0_0] : memref<5x128xf32, #tpu.memory_space<vmem>>, vector<5x128xf32>
    %c0_1 = arith.constant 0 : index
    %c0_2 = arith.constant 0 : index
    %1 = vector.load %arg2[%c0_1, %c0_2] : memref<4x640xf32, #tpu.memory_space<vmem>>, vector<4x128xf32>
    %2 = vector.extract_strided_slice %0 {offsets = [0, 0], sizes = [1, 128], strides = [1, 1]} : vector<5x128xf32> to vector<1x128xf32>
    %3 = vector.broadcast %2 : vector<1x128xf32> to vector<4x128xf32>
    %4 = arith.mulf %1, %3 : vector<4x128xf32>
    %c0_3 = arith.constant 0 : index
    %c128 = arith.constant 128 : index
    %5 = vector.load %arg2[%c0_3, %c128] : memref<4x640xf32, #tpu.memory_space<vmem>>, vector<4x128xf32>
    %6 = vector.extract_strided_slice %0 {offsets = [1, 0], sizes = [1, 128], strides = [1, 1]} : vector<5x128xf32> to vector<1x128xf32>
    %7 = vector.broadcast %6 : vector<1x128xf32> to vector<4x128xf32>
    %8 = arith.mulf %5, %7 : vector<4x128xf32>
    %9 = arith.maximumf %4, %8 : vector<4x128xf32>
    %c0_4 = arith.constant 0 : index
    %c256 = arith.constant 256 : index
    %10 = vector.load %arg2[%c0_4, %c256] : memref<4x640xf32, #tpu.memory_space<vmem>>, vector<4x128xf32>
    %11 = vector.extract_strided_slice %0 {offsets = [2, 0], sizes = [1, 128], strides = [1, 1]} : vector<5x128xf32> to vector<1x128xf32>
    %12 = vector.broadcast %11 : vector<1x128xf32> to vector<4x128xf32>
    %13 = arith.mulf %10, %12 : vector<4x128xf32>
    %14 = arith.maximumf %9, %13 : vector<4x128xf32>
    %c0_5 = arith.constant 0 : index
    %c384 = arith.constant 384 : index
    %15 = vector.load %arg2[%c0_5, %c384] : memref<4x640xf32, #tpu.memory_space<vmem>>, vector<4x128xf32>
    %16 = vector.extract_strided_slice %0 {offsets = [3, 0], sizes = [1, 128], strides = [1, 1]} : vector<5x128xf32> to vector<1x128xf32>
    %17 = vector.broadcast %16 : vector<1x128xf32> to vector<4x128xf32>
    %18 = arith.mulf %15, %17 : vector<4x128xf32>
    %19 = arith.maximumf %14, %18 : vector<4x128xf32>
    %c0_6 = arith.constant 0 : index
    %c512 = arith.constant 512 : index
    %20 = vector.load %arg2[%c0_6, %c512] : memref<4x640xf32, #tpu.memory_space<vmem>>, vector<4x128xf32>
    %21 = vector.extract_strided_slice %0 {offsets = [4, 0], sizes = [1, 128], strides = [1, 1]} : vector<5x128xf32> to vector<1x128xf32>
    %22 = vector.broadcast %21 : vector<1x128xf32> to vector<4x128xf32>
    %23 = arith.mulf %20, %22 : vector<4x128xf32>
    %24 = arith.maximumf %19, %23 : vector<4x128xf32>
    %c0_7 = arith.constant 0 : index
    %c0_8 = arith.constant 0 : index
    %25 = vector.load %arg3[%c0_7, %c0_8] : memref<256x512xf32, #tpu.memory_space<vmem>>, vector<256x128xf32>
    %26 = vector.extract_strided_slice %24 {offsets = [0, 0], sizes = [1, 128], strides = [1, 1]} : vector<4x128xf32> to vector<1x128xf32>
    %27 = vector.broadcast %26 : vector<1x128xf32> to vector<256x128xf32>
    %28 = arith.minimumf %25, %27 : vector<256x128xf32>
    %c0_9 = arith.constant 0 : index
    %c128_10 = arith.constant 128 : index
    %29 = vector.load %arg3[%c0_9, %c128_10] : memref<256x512xf32, #tpu.memory_space<vmem>>, vector<256x128xf32>
    %30 = vector.extract_strided_slice %24 {offsets = [1, 0], sizes = [1, 128], strides = [1, 1]} : vector<4x128xf32> to vector<1x128xf32>
    %31 = vector.broadcast %30 : vector<1x128xf32> to vector<256x128xf32>
    %32 = arith.minimumf %29, %31 : vector<256x128xf32>
    %33 = arith.maximumf %28, %32 : vector<256x128xf32>
    %c0_11 = arith.constant 0 : index
    %c256_12 = arith.constant 256 : index
    %34 = vector.load %arg3[%c0_11, %c256_12] : memref<256x512xf32, #tpu.memory_space<vmem>>, vector<256x128xf32>
    %35 = vector.extract_strided_slice %24 {offsets = [2, 0], sizes = [1, 128], strides = [1, 1]} : vector<4x128xf32> to vector<1x128xf32>
    %36 = vector.broadcast %35 : vector<1x128xf32> to vector<256x128xf32>
    %37 = arith.minimumf %34, %36 : vector<256x128xf32>
    %38 = arith.maximumf %33, %37 : vector<256x128xf32>
    %c0_13 = arith.constant 0 : index
    %c384_14 = arith.constant 384 : index
    %39 = vector.load %arg3[%c0_13, %c384_14] : memref<256x512xf32, #tpu.memory_space<vmem>>, vector<256x128xf32>
    %40 = vector.extract_strided_slice %24 {offsets = [3, 0], sizes = [1, 128], strides = [1, 1]} : vector<4x128xf32> to vector<1x128xf32>
    %41 = vector.broadcast %40 : vector<1x128xf32> to vector<256x128xf32>
    %42 = arith.minimumf %39, %41 : vector<256x128xf32>
    %43 = arith.maximumf %38, %42 : vector<256x128xf32>
    %c0_15 = arith.constant 0 : index
    %c0_16 = arith.constant 0 : index
    %44 = vector.load %arg4[%c0_15, %c0_16] : memref<2x256xf32, #tpu.memory_space<vmem>>, vector<2x256xf32>
    %cst = arith.constant dense<0.000000e+00> : vector<2x128xf32>
    %45 = tpu.matmul %44, %43, %cst {dimension_numbers = #tpu.dot_dimension_numbers<[1], [0], [0], [1], [0, 0, 1, 1], [], []>, precision = #tpu.contract_precision<fp32>} : vector<2x256xf32>, vector<256x128xf32>, vector<2x128xf32> -> vector<2x128xf32>
    %46 = vector.extract_strided_slice %45 {offsets = [0, 0], sizes = [1, 128], strides = [1, 1]} : vector<2x128xf32> to vector<1x128xf32>
    %47 = vector.extract_strided_slice %45 {offsets = [1, 0], sizes = [1, 128], strides = [1, 1]} : vector<2x128xf32> to vector<1x128xf32>
    %48 = arith.divf %46, %47 : vector<1x128xf32>
    %49 = arith.cmpf one, %48, %48 : vector<1x128xf32>
    %cst_17 = arith.constant 0.000000e+00 : f32
    %50 = vector.broadcast %cst_17 : f32 to vector<1x128xf32>
    %51 = arith.select %49, %50, %48 : vector<1x128xi1>, vector<1x128xf32>
    %c0_18 = arith.constant 0 : index
    %c0_19 = arith.constant 0 : index
    %52 = vector.load %arg5[%c0_18, %c0_19] : memref<1x128xf32, #tpu.memory_space<vmem>>, vector<1x128xf32>
    tpu.vector_store %arg5[%c0_18, %c0_19], %51 {strides = array<i32>} : memref<1x128xf32, #tpu.memory_space<vmem>>, vector<1x128xf32>,
    return
  }
  func.func @transform_0(%arg0: i32) -> (i32, i32) {
    %c0_i32 = arith.constant 0 : i32
    %c0_i32_0 = arith.constant 0 : i32
    return %c0_i32, %arg0 : i32, i32
  }
  func.func @transform_1(%arg0: i32) -> (i32, i32) {
    %c0_i32 = arith.constant 0 : i32
    %c0_i32_0 = arith.constant 0 : i32
    %c0_i32_1 = arith.constant 0 : i32
    return %c0_i32, %c0_i32_0 : i32, i32
  }
  func.func @transform_2(%arg0: i32) -> (i32, i32) {
    %c0_i32 = arith.constant 0 : i32
    %c0_i32_0 = arith.constant 0 : i32
    %c0_i32_1 = arith.constant 0 : i32
    return %c0_i32, %c0_i32_0 : i32, i32
  }
  func.func @transform_3(%arg0: i32) -> (i32, i32) {
    %c0_i32 = arith.constant 0 : i32
    %c0_i32_0 = arith.constant 0 : i32
    %c0_i32_1 = arith.constant 0 : i32
    return %c0_i32, %c0_i32_0 : i32, i32
  }
  func.func @transform_4(%arg0: i32) -> (i32, i32) {
    %c0_i32 = arith.constant 0 : i32
    %c0_i32_0 = arith.constant 0 : i32
    return %c0_i32, %arg0 : i32, i32
  }
}

</mosaic_0001>

<bundles_post_ra>
// kernel: tpu_custom_call.1
= control target key start
LH: loop header
LB: loop body
LE: loop exit
PB: predicated region body
PF: predicated region fallthrough
CT: control target
= control target key end

     0   :  { %9 = vsyncpa [#allocation3], 0  ;;  %s2492_s0 = inlined_call_operand.hbm [shape: f32[5,128], index: 0, kind: input, shape index: {}]   ;;  %s2493_s1 = inlined_call_operand.hbm [shape: f32[4,640], index: 1, kind: input, shape index: {}]   ;;  %s2494_s2 = inlined_call_operand.hbm [shape: f32[256,512], index: 2, kind: input, shape index: {}]   ;;  %s2495_s3 = inlined_call_operand.vmem [shape: f32[2,256], index: 3, kind: input, shape index: {}]   ;;  %s2496_s4 = inlined_call_operand.hbm [shape: f32[1,128], index: 4, kind: output, shape index: {}]  }
   0x1   :  { %10 = vsyncpa [#allocation6], 0 }
   0x2   :  { %11 = vsyncpa [#allocation4], 0  ;;  %s1861_s15 = smov [#allocation5]   ;;  %s1862_s17 = smov [#allocation2]  }
   0x3   :  { %s28_s16 = sshll.u32 %s1861_s15, 4  ;;  %s18_s18 = sshll.u32 %s1862_s17, 4  ;;  %s29_s16 = int_to_ptr.vmem [resolvable:$true] %s28_s16  ;;  %s19_s18 = int_to_ptr.vmem [resolvable:$true] %s18_s18 }
   0x4   :  { %s1767_s21 = scalar_lea.hbm %s2493_s1, 320 }
   0x5   :  { %p1768_p0 = scmp.ne.s32.totalorder %s2493_s1, %s1767_s21  ;;  %p1771_p1 = scmp.lt.u32.totalorder %s1767_s21, %s2493_s1 }
   0x7   :  { %p1773_p2 = pnand %p1771_p1, %p1768_p0 }
   0x9   :  { %1776 = shalt.err (!%p1773_p2)
}
   0xa   :  { %s1777_s26 = scalar_lea.vmem %s29_s16, 320  ;;  %p1782_p4 = scmp.lt.s32.totalorder %s29_s16, %s29_s16 }
   0xb   :  { %p1778_p3 = scmp.ne.s32.totalorder %s29_s16, %s1777_s26  ;;  %p1783_p5 = scmp.lt.s32.totalorder %s1777_s26, %s1777_s26 }
   0xd   :  { %p1784_p6 = por %p1783_p5, %p1782_p4 }
   0xf   :  { %p1785_p7 = pnand %p1784_p6, %p1778_p3 }
  0x11   :  { %1788 = shalt.err (!%p1785_p7)
}
  0x12   :  { %31 = dma.hbm_to_vmem [thread:$0]  %s2493_s1, 320, %s29_s16, [#allocation6]  }
  0x13   :  { %s1789_s5 = scalar_lea.hbm %s2492_s0, 128 }
  0x14   :  { %p1790_p8 = scmp.ne.s32.totalorder %s2492_s0, %s1789_s5  ;;  %p1793_p9 = scmp.lt.u32.totalorder %s1789_s5, %s2492_s0 }
  0x16   :  { %p1795_p10 = pnand %p1793_p9, %p1790_p8 }
  0x18   :  { %1798 = shalt.err (!%p1795_p10)
}
  0x19   :  { %s1799_s10 = scalar_lea.vmem %s19_s18, 128  ;;  %p1804_p12 = scmp.lt.s32.totalorder %s19_s18, %s19_s18 }
  0x1a   :  { %p1800_p11 = scmp.ne.s32.totalorder %s19_s18, %s1799_s10  ;;  %p1805_p13 = scmp.lt.s32.totalorder %s1799_s10, %s1799_s10 }
  0x1c   :  { %p1806_p0 = por %p1805_p13, %p1804_p12 }
  0x1e   :  { %p1807_p1 = pnand %p1806_p0, %p1800_p11 }
  0x20   :  { %1810 = shalt.err (!%p1807_p1)
}
  0x21   :  { %21 = dma.hbm_to_vmem [thread:$0]  %s2492_s0, 128, %s19_s18, [#allocation3]  }
  0x22   :  { %s1863_s12 = smov [#allocation7]   ;;  %s1811_s16 = scalar_lea.hbm %s2494_s2, 16384 }
  0x23   :  { %s37_s13 = sshll.u32 %s1863_s12, 4  ;;  %p1812_p2 = scmp.ne.s32.totalorder %s2494_s2, %s1811_s16  ;;  %s38_s13 = int_to_ptr.vmem [resolvable:$true] %s37_s13 }
  0x24   :  { %p1815_p3 = scmp.lt.u32.totalorder %s1811_s16, %s2494_s2 }
  0x26   :  { %p1817_p4 = pnand %p1815_p3, %p1812_p2 }
  0x28   :  { %1820 = shalt.err (!%p1817_p4)
}
  0x29   :  { %s1821_s22 = scalar_lea.vmem %s38_s13, 16384  ;;  %p1826_p6 = scmp.lt.s32.totalorder %s38_s13, %s38_s13 }
  0x2a   :  { %p1822_p5 = scmp.ne.s32.totalorder %s38_s13, %s1821_s22  ;;  %p1827_p7 = scmp.lt.s32.totalorder %s1821_s22, %s1821_s22 }
  0x2c   :  { %p1828_p8 = por %p1827_p7, %p1826_p6 }
  0x2e   :  { %p1829_p9 = pnand %p1828_p8, %p1822_p5 }
  0x30   :  { %1832 = shalt.err (!%p1829_p9)
}
  0x31   :  { %s1864_s0 = smov 512   ;;  %s1865_s18 = smov 32  }
  0x32   :  { %43 = dma.hbm_to_vmem [thread:$0]  %s2494_s2, 16384, %s38_s13, [#allocation6], %s1864_s0, %s1864_s0, %s1865_s18  }
  0x33   :  { %1855 = dma.done.wait [#allocation3], 128  }
  0x34   :  { %1856 = vsyncadd [#allocation3], 4294967168 }
  0x35   :  { %1857 = dma.done.wait [#allocation6], 16704  }
  0x36   :  { %1858 = vsyncadd [#allocation6], 4294950592  ;;  %v57_v0 = vlaneseq  ;;  %v55_v7 = vld [vmem:[#allocation2] sm:$0x1f]  ;;  %v56_v8 = vld [vmem:[#allocation5] sm:$0xf] }
  0x37   :  { %v62_v9 = vld [vmem:[#allocation5 + $0x4] sm:$0xf]  ;;  %v69_v12 = vld [vmem:[#allocation5 + $0x8] sm:$0xf]  ;;  %v76_v15 = vld [vmem:[#allocation5 + $0xc] sm:$0xf] }
  0x38   :  { %v58_v1 = vshrl.u32 %v57_v0, 7  ;;  %v83_v20 = vld [vmem:[#allocation5 + $0x10] sm:$0xf]  ;;  %v106_v27 = vld [vmem:[#allocation7 + $0x200] sm:$0xff]  ;;  %v174_v29 = vld [vmem:[#allocation7 + $0x208] sm:$0xff] }
  0x39   :  { %v107_v28 = vld [vmem:[#allocation7 + $0x220] sm:$0xff]  ;;  %v175_v30 = vld [vmem:[#allocation7 + $0x228] sm:$0xff]  ;;  %v274_v31 = vld [vmem:[#allocation7 + $0x210] sm:$0xff] }
  0x3a   :  { %v59_v2 = vsub.s32 0, %v58_v1  ;;  %v65_v3 = vsub.s32 1, %v58_v1  ;;  %v72_v4 = vsub.s32 2, %v58_v1  ;;  %v79_v5 = vsub.s32 3, %v58_v1  ;;  %v275_v34 = vld [vmem:[#allocation7 + $0x230] sm:$0xff]  ;;  %v374_v36 = vld [vmem:[#allocation7 + $0x218] sm:$0xff] }
  0x3b   :  { %v86_v6 = vsub.s32 4, %v58_v1  ;;  %v375_v37 = vld [vmem:[#allocation7 + $0x238] sm:$0xff]  ;;  %v90_v39 = vld [vmem:[#allocation7] sm:$0xff]  ;;  %v158_v41 = vld [vmem:[#allocation7 + $0x8] sm:$0xff] }
  0x3c   :  { %v60_v10 = vrot.slane %v55_v7, %v59_v2  ;;  %v66_v11 = vrot.slane %v55_v7, %v65_v3  ;;  %v73_v13 = vrot.slane %v55_v7, %v72_v4  ;;  %v80_v14 = vrot.slane %v55_v7, %v79_v5  ;;  %v91_v40 = vld [vmem:[#allocation7 + $0x20] sm:$0xff]  ;;  %v159_v46 = vld [vmem:[#allocation7 + $0x28] sm:$0xff]  ;;  %v258_v47 = vld [vmem:[#allocation7 + $0x10] sm:$0xff] }
  0x3d   :  { %v87_v19 = vrot.slane %v55_v7, %v86_v6  ;;  %v259_v48 = vld [vmem:[#allocation7 + $0x30] sm:$0xff]  ;;  %v358_v53 = vld [vmem:[#allocation7 + $0x18] sm:$0xff]  ;;  %v108_v59 = vld [vmem:[#allocation7 + $0x240] sm:$0xff] }
  0x3e   :  { %v61_v16 = vmul.f32 %v60_v10, %v56_v8  ;;  %v67_v17 = vmul.f32 %v66_v11, %v62_v9  ;;  %v74_v18 = vmul.f32 %v73_v13, %v69_v12  ;;  %v81_v22 = vmul.f32 %v80_v14, %v76_v15  ;;  %v359_v54 = vld [vmem:[#allocation7 + $0x38] sm:$0xff]  ;;  %v109_v60 = vld [vmem:[#allocation7 + $0x260] sm:$0xff]  ;;  %v176_v1 = vld [vmem:[#allocation7 + $0x248] sm:$0xff] }
  0x3f   :  { %v88_v24 = vmul.f32 %v87_v19, %v83_v20  ;;  %v276_v7 = vld [vmem:[#allocation7 + $0x250] sm:$0xff] }
  0x40   :  { %v68_v21 = vmax.f32 %v61_v16, %v67_v17  ;;  %v277_v8 = vld [vmem:[#allocation7 + $0x270] sm:$0xff]  ;;  %v376_v17 = vld [vmem:[#allocation7 + $0x258] sm:$0xff] }
  0x42   :  { %v75_v23 = vmax.f32 %v68_v21, %v74_v18  ;;  %v377_v18 = vld [vmem:[#allocation7 + $0x278] sm:$0xff] }
  0x44   :  { %v82_v25 = vmax.f32 %v75_v23, %v81_v22  ;;  %v92_v23 = vld [vmem:[#allocation7 + $0x40] sm:$0xff] }
  0x46   :  { %v89_v26 = vmax.f32 %v82_v25, %v88_v24 }
  0x48   :  { %v1928_v32 = vrot.slane %v89_v26, %v59_v2  ;;  %v1930_v33 = vrot.slane %v89_v26, %v65_v3  ;;  %v1932_v35 = vrot.slane %v89_v26, %v72_v4  ;;  %v1934_v38 = vrot.slane %v89_v26, %v79_v5  ;;  %v177_v2 = vld [vmem:[#allocation7 + $0x268] sm:$0xff] }
  0x4a   :  { %v142_v42 = vmin.f32 %v106_v27, %v1928_v32  ;;  %v143_v43 = vmin.f32 %v107_v28, %v1928_v32  ;;  %v210_v44 = vmin.f32 %v174_v29, %v1930_v33  ;;  %v211_v45 = vmin.f32 %v175_v30, %v1930_v33  ;;  %v93_v28 = vld [vmem:[#allocation7 + $0x60] sm:$0xff]  ;;  %v160_v29 = vld [vmem:[#allocation7 + $0x48] sm:$0xff] }
  0x4b   :  { %v310_v49 = vmin.f32 %v274_v31, %v1932_v35  ;;  %v311_v50 = vmin.f32 %v275_v34, %v1932_v35  ;;  %v410_v51 = vmin.f32 %v374_v36, %v1934_v38  ;;  %v411_v52 = vmin.f32 %v375_v37, %v1934_v38  ;;  %v161_v37 = vld [vmem:[#allocation7 + $0x68] sm:$0xff] }
  0x4c   :  { %v242_v55 = vmax.f32 %v142_v42, %v210_v44  ;;  %v243_v56 = vmax.f32 %v143_v43, %v211_v45  ;;  %v126_v57 = vmin.f32 %v90_v39, %v1928_v32  ;;  %v127_v58 = vmin.f32 %v91_v40, %v1928_v32  ;;  %v260_v39 = vld [vmem:[#allocation7 + $0x50] sm:$0xff] }
  0x4d   :  { %v194_v61 = vmin.f32 %v158_v41, %v1930_v33  ;;  %v195_v62 = vmin.f32 %v159_v46, %v1930_v33  ;;  %v294_v63 = vmin.f32 %v258_v47, %v1932_v35  ;;  %v295_v0 = vmin.f32 %v259_v48, %v1932_v35  ;;  %v261_v48 = vld [vmem:[#allocation7 + $0x70] sm:$0xff] }
  0x4e   :  { %v342_v3 = vmax.f32 %v242_v55, %v310_v49  ;;  %v343_v4 = vmax.f32 %v243_v56, %v311_v50  ;;  %v394_v5 = vmin.f32 %v358_v53, %v1934_v38  ;;  %v395_v6 = vmin.f32 %v359_v54, %v1934_v38  ;;  %v360_v53 = vld [vmem:[#allocation7 + $0x58] sm:$0xff]  ;;  %v110_v55 = vld [vmem:[#allocation7 + $0x280] sm:$0xff] }
  0x4f   :  { %v226_v9 = vmax.f32 %v126_v57, %v194_v61  ;;  %v227_v10 = vmax.f32 %v127_v58, %v195_v62  ;;  %v144_v11 = vmin.f32 %v108_v59, %v1928_v32  ;;  %v145_v12 = vmin.f32 %v109_v60, %v1928_v32  ;;  %v361_v54 = vld [vmem:[#allocation7 + $0x78] sm:$0xff] }
  0x50   :  { %v1954_v13 = vmax.f32 %v342_v3, %v410_v51  ;;  %v1956_v14 = vmax.f32 %v343_v4, %v411_v52  ;;  %v212_v15 = vmin.f32 %v176_v1, %v1930_v33  ;;  %v213_v16 = vmin.f32 %v177_v2, %v1930_v33  ;;  %v178_v1 = vld [vmem:[#allocation7 + $0x288] sm:$0xff] }
  0x51   :  { %v326_v19 = vmax.f32 %v226_v9, %v294_v63  ;;  %v327_v20 = vmax.f32 %v227_v10, %v295_v0  ;;  %v312_v21 = vmin.f32 %v276_v7, %v1932_v35  ;;  %v313_v22 = vmin.f32 %v277_v8, %v1932_v35  ;;  %v111_v0 = vld [vmem:[#allocation7 + $0x2a0] sm:$0xff]  ;;  %v179_v2 = vld [vmem:[#allocation7 + $0x2a8] sm:$0xff]  ;;  %v278_v7 = vld [vmem:[#allocation7 + $0x290] sm:$0xff] }
  0x52   :  { %v519_v24 = vand.u32 4294901760, %v1954_v13  ;;  %v522_v25 = vand.u32 4294901760, %v1956_v14  ;;  %v244_v26 = vmax.f32 %v144_v11, %v212_v15  ;;  %v245_v27 = vmax.f32 %v145_v12, %v213_v16  ;;  %v279_v8 = vld [vmem:[#allocation7 + $0x2b0] sm:$0xff]  ;;  %v378_v9 = vld [vmem:[#allocation7 + $0x298] sm:$0xff] }
  0x53   :  { %v426_v30 = vmax.f32 %v326_v19, %v394_v5  ;;  %v427_v31 = vmax.f32 %v327_v20, %v395_v6  ;;  %v412_v34 = vmin.f32 %v376_v17, %v1934_v38  ;;  %v413_v36 = vmin.f32 %v377_v18, %v1934_v38  ;;  %v379_v16 = vld [vmem:[#allocation7 + $0x2b8] sm:$0xff] }
  0x54   :  { %v1970_v40 = vpack.c.bf16 %v522_v25, %v519_v24  ;;  %v344_v41 = vmax.f32 %v244_v26, %v312_v21  ;;  %v345_v42 = vmax.f32 %v245_v27, %v313_v22  ;;  %v128_v43 = vmin.f32 %v92_v23, %v1928_v32  ;;  %v94_v21 = vld [vmem:[#allocation7 + $0x80] sm:$0xff] }
  0x55   :  { %v471_v44 = vand.u32 4294901760, %v426_v30  ;;  %v474_v45 = vand.u32 4294901760, %v427_v31  ;;  %v129_v46 = vmin.f32 %v93_v28, %v1928_v32  ;;  %v196_v47 = vmin.f32 %v160_v29, %v1930_v33  ;;  %v95_v28 = vld [vmem:[#allocation7 + $0xa0] sm:$0xff] }
  0x56   :  { %1568 = vmatprep.subr.bf16.mxu0 %v1970_v40  ;;  %v444_v49 = vmax.f32 %v344_v41, %v412_v34  ;;  %v445_v50 = vmax.f32 %v345_v42, %v413_v36  ;;  %v197_v51 = vmin.f32 %v161_v37, %v1930_v33  ;;  %v296_v52 = vmin.f32 %v260_v39, %v1932_v35  ;;  %v162_v42 = vld [vmem:[#allocation7 + $0x88] sm:$0xff] }
  0x57   :  { %v1978_v56 = vpack.c.bf16 %v474_v45, %v471_v44  ;;  %v1980_v57 = vsub.f32 %v426_v30, %v471_v44  ;;  %v1982_v58 = vsub.f32 %v427_v31, %v474_v45  ;;  %v228_v59 = vmax.f32 %v128_v43, %v196_v47  ;;  %v163_v43 = vld [vmem:[#allocation7 + $0xa8] sm:$0xff] }
  0x58   :  { %v525_v60 = vand.u32 4294901760, %v444_v49  ;;  %v528_v61 = vand.u32 4294901760, %v445_v50  ;;  %v229_v62 = vmax.f32 %v129_v46, %v197_v51  ;;  %v297_v63 = vmin.f32 %v261_v48, %v1932_v35  ;;  %v262_v48 = vld [vmem:[#allocation7 + $0x90] sm:$0xff] }
  0x59   :  { %1570 = vmatpush3.bf16.msra.mxu0 %v1978_v56  ;;  %v328_v3 = vmax.f32 %v228_v59, %v296_v52  ;;  %v396_v4 = vmin.f32 %v360_v53, %v1934_v38  ;;  %v397_v5 = vmin.f32 %v361_v54, %v1934_v38  ;;  %v146_v6 = vmin.f32 %v110_v55, %v1928_v32  ;;  %v362_v54 = vld [vmem:[#allocation7 + $0x98] sm:$0xff] }
  0x5a   :  { %v1989_v10 = vpack.c.bf16 %v528_v61, %v525_v60  ;;  %v1991_v11 = vsub.f32 %v444_v49, %v525_v60  ;;  %v1993_v12 = vsub.f32 %v445_v50, %v528_v61  ;;  %v329_v15 = vmax.f32 %v229_v62, %v297_v63  ;;  %v263_v49 = vld [vmem:[#allocation7 + $0xb0] sm:$0xff]  ;;  %v363_v55 = vld [vmem:[#allocation7 + $0xb8] sm:$0xff] }
  0x5b   :  { %v428_v17 = vmax.f32 %v328_v3, %v396_v4  ;;  %v147_v18 = vmin.f32 %v111_v0, %v1928_v32  ;;  %v214_v19 = vmin.f32 %v178_v1, %v1930_v33  ;;  %v215_v20 = vmin.f32 %v179_v2, %v1930_v33 }
  0x5c   :  { %1572 = vmatprep.subr.bf16.mxu0 %v1989_v10  ;;  %v429_v22 = vmax.f32 %v329_v15, %v397_v5  ;;  %v314_v23 = vmin.f32 %v278_v7, %v1932_v35  ;;  %v315_v26 = vmin.f32 %v279_v8, %v1932_v35  ;;  %v414_v27 = vmin.f32 %v378_v9, %v1934_v38  ;;  %v112_v7 = vld [vmem:[#allocation7 + $0x2c0] sm:$0xff]  ;;  %v180_v9 = vld [vmem:[#allocation7 + $0x2c8] sm:$0xff] }
  0x5d   :  { %v477_v29 = vand.u32 4294901760, %v428_v17  ;;  %v246_v30 = vmax.f32 %v146_v6, %v214_v19  ;;  %v247_v31 = vmax.f32 %v147_v18, %v215_v20  ;;  %v415_v34 = vmin.f32 %v379_v16, %v1934_v38  ;;  %v113_v8 = vld [vmem:[#allocation7 + $0x2e0] sm:$0xff]  ;;  %v181_v19 = vld [vmem:[#allocation7 + $0x2e8] sm:$0xff] }
  0x5e   :  { %v480_v36 = vand.u32 4294901760, %v429_v22  ;;  %v2006_v37 = vsub.f32 %v1954_v13, %v519_v24  ;;  %v2011_v39 = vsub.f32 %v1956_v14, %v522_v25  ;;  %v130_v41 = vmin.f32 %v94_v21, %v1928_v32 }
  0x5f   :  { %v2014_v44 = vsub.f32 %v428_v17, %v477_v29  ;;  %v346_v45 = vmax.f32 %v246_v30, %v314_v23  ;;  %v347_v46 = vmax.f32 %v247_v31, %v315_v26  ;;  %v131_v47 = vmin.f32 %v95_v28, %v1928_v32  ;;  %v280_v26 = vld [vmem:[#allocation7 + $0x2d0] sm:$0xff] }
  0x60   :  { %v2017_v50 = vpack.c.bf16 %v480_v36, %v477_v29  ;;  %v2019_v13 = vsub.f32 %v429_v22, %v480_v36  ;;  %v2504_v24 = vand.u32 4294901760, %v2006_v37  ;;  %v2503_v14 = vand.u32 4294901760, %v2011_v39 }
  0x61   :  { %v446_v25 = vmax.f32 %v346_v45, %v414_v27  ;;  %v447_v51 = vmax.f32 %v347_v46, %v415_v34  ;;  %v198_v52 = vmin.f32 %v162_v42, %v1930_v33  ;;  %v199_v53 = vmin.f32 %v163_v43, %v1930_v33  ;;  %v281_v27 = vld [vmem:[#allocation7 + $0x2f0] sm:$0xff]  ;;  %v380_v43 = vld [vmem:[#allocation7 + $0x2d8] sm:$0xff] }
  0x62   :  { %1574 = vmatpush3.bf16.msra.mxu0 %v2017_v50  ;;  %v698_v59 = vsub.f32 %v2006_v37, %v2504_v24  ;;  %v705_v60 = vsub.f32 %v2011_v39, %v2503_v14  ;;  %v298_v61 = vmin.f32 %v262_v48, %v1932_v35  ;;  %v299_v62 = vmin.f32 %v263_v49, %v1932_v35  ;;  %v381_v45 = vld [vmem:[#allocation7 + $0x2f8] sm:$0xff]  ;;  %v118_v24 = vld [vmem:[#allocation7 + $0x380] sm:$0xff] }
  0x63   :  { %v531_v63 = vand.u32 4294901760, %v446_v25  ;;  %v534_v0 = vand.u32 4294901760, %v447_v51  ;;  %v230_v1 = vmax.f32 %v130_v41, %v198_v52  ;;  %v231_v2 = vmax.f32 %v131_v47, %v199_v53 }
  0x64   :  { %v699_v3 = vand.u32 4294901760, %v698_v59  ;;  %v706_v4 = vand.u32 4294901760, %v705_v60  ;;  %v398_v5 = vmin.f32 %v362_v54, %v1934_v38  ;;  %v399_v6 = vmin.f32 %v363_v55, %v1934_v38  ;;  %v96_v54 = vld [vmem:[#allocation7 + $0xc0] sm:$0xff] }
  0x65   :  { %v2036_v15 = vpack.c.bf16 %v534_v0, %v531_v63  ;;  %v2038_v16 = vsub.f32 %v446_v25, %v531_v63  ;;  %v2040_v17 = vsub.f32 %v447_v51, %v534_v0  ;;  %v330_v18 = vmax.f32 %v230_v1, %v298_v61  ;;  %v164_v63 = vld [vmem:[#allocation7 + $0xc8] sm:$0xff] }
  0x66   :  { %v1599_v20 = vpack.c.bf16 %v706_v4, %v699_v3  ;;  %v331_v21 = vmax.f32 %v231_v2, %v299_v62  ;;  %v2502_v22 = vand.u32 4294901760, %v1980_v57  ;;  %v2501_v23 = vand.u32 4294901760, %v1982_v58  ;;  %v97_v62 = vld [vmem:[#allocation7 + $0xe0] sm:$0xff]  ;;  %v165_v4 = vld [vmem:[#allocation7 + $0xe8] sm:$0xff] }
  0x67   :  { %1576 = vmatprep.subr.bf16.mxu0 %v2036_v15  ;;  %v430_v28 = vmax.f32 %v330_v18, %v398_v5  ;;  %v148_v29 = vmin.f32 %v112_v7, %v1928_v32  ;;  %v149_v30 = vmin.f32 %v113_v8, %v1928_v32  ;;  %v216_v31 = vmin.f32 %v180_v9, %v1930_v33  ;;  %v264_v9 = vld [vmem:[#allocation7 + $0xd0] sm:$0xff] }
  0x68   :  { %1600 = vmatprep.subr.bf16.mxu1 %v1599_v20  ;;  %v431_v34 = vmax.f32 %v331_v21, %v399_v6  ;;  %v586_v36 = vsub.f32 %v1980_v57, %v2502_v22  ;;  %v593_v41 = vsub.f32 %v1982_v58, %v2501_v23  ;;  %v217_v42 = vmin.f32 %v181_v19, %v1930_v33  ;;  %v265_v18 = vld [vmem:[#allocation7 + $0xf0] sm:$0xff]  ;;  %v101_v23 = vld [vmem:[#allocation7 + $0x160] sm:$0xff]  ;;  %v168_v22 = vld [vmem:[#allocation7 + $0x148] sm:$0xff] }
  0x69   :  { %v483_v46 = vand.u32 4294901760, %v430_v28  ;;  %v248_v47 = vmax.f32 %v148_v29, %v216_v31  ;;  %v316_v48 = vmin.f32 %v280_v26, %v1932_v35  ;;  %v317_v49 = vmin.f32 %v281_v27, %v1932_v35  ;;  %v364_v31 = vld [vmem:[#allocation7 + $0xd8] sm:$0xff] }
  0x6a   :  { %v486_v25 = vand.u32 4294901760, %v431_v34  ;;  %v587_v51 = vand.u32 4294901760, %v586_v36  ;;  %v594_v52 = vand.u32 4294901760, %v593_v41  ;;  %v249_v53 = vmax.f32 %v149_v30, %v217_v42 }
  0x6b   :  { %v2057_v55 = vsub.f32 %v430_v28, %v483_v46  ;;  %v348_v59 = vmax.f32 %v248_v47, %v316_v48  ;;  %v416_v60 = vmin.f32 %v380_v43, %v1934_v38  ;;  %v417_v61 = vmin.f32 %v381_v45, %v1934_v38  ;;  %v365_v43 = vld [vmem:[#allocation7 + $0xf8] sm:$0xff] }
  0x6c   :  { %v2061_v0 = vpack.c.bf16 %v486_v25, %v483_v46  ;;  %v2063_v1 = vsub.f32 %v431_v34, %v486_v25  ;;  %v1601_v2 = vpack.c.bf16 %v594_v52, %v587_v51  ;;  %v349_v3 = vmax.f32 %v249_v53, %v317_v49  ;;  %v114_v49 = vld [vmem:[#allocation7 + $0x300] sm:$0xff] }
  0x6d   :  { %v448_v5 = vmax.f32 %v348_v59, %v416_v60  ;;  %v2500_v6 = vand.u32 4294901760, %v1991_v11  ;;  %v2499_v7 = vand.u32 4294901760, %v1993_v12  ;;  %v132_v8 = vmin.f32 %v96_v54, %v1928_v32  ;;  %v115_v25 = vld [vmem:[#allocation7 + $0x320] sm:$0xff]  ;;  %v182_v59 = vld [vmem:[#allocation7 + $0x308] sm:$0xff] }
  0x6e   :  { %1578 = vmatpush3.bf16.msra.mxu0 %v2061_v0  ;;  %1602 = vmatpush3.bf16.msra.mxu1 %v1601_v2  ;;  %v449_v19 = vmax.f32 %v349_v3, %v417_v61  ;;  %v133_v20 = vmin.f32 %v97_v62, %v1928_v32  ;;  %v200_v21 = vmin.f32 %v164_v63, %v1930_v33  ;;  %v2498_v26 = vand.u32 4294901760, %v2014_v44  ;;  %v183_v60 = vld [vmem:[#allocation7 + $0x328] sm:$0xff]  ;;  %v282_v3 = vld [vmem:[#allocation7 + $0x310] sm:$0xff] }
  0x6f   :  { %v537_v27 = vand.u32 4294901760, %v448_v5  ;;  %v712_v28 = vsub.f32 %v1991_v11, %v2500_v6  ;;  %v719_v29 = vsub.f32 %v1993_v12, %v2499_v7  ;;  %v201_v30 = vmin.f32 %v165_v4, %v1930_v33  ;;  %v283_v4 = vld [vmem:[#allocation7 + $0x330] sm:$0xff] }
  0x70   :  { %v540_v34 = vand.u32 4294901760, %v449_v19  ;;  %v232_v36 = vmax.f32 %v132_v8, %v200_v21  ;;  %v300_v41 = vmin.f32 %v264_v9, %v1932_v35  ;;  %v301_v42 = vmin.f32 %v265_v18, %v1932_v35 }
  0x71   :  { %v2081_v45 = vsub.f32 %v448_v5, %v537_v27  ;;  %v713_v46 = vand.u32 4294901760, %v712_v28  ;;  %v720_v47 = vand.u32 4294901760, %v719_v29  ;;  %v233_v48 = vmax.f32 %v133_v20, %v201_v30  ;;  %v383_v29 = vld [vmem:[#allocation7 + $0x338] sm:$0xff] }
  0x72   :  { %v2083_v51 = vpack.c.bf16 %v540_v34, %v537_v27  ;;  %v2085_v52 = vsub.f32 %v449_v19, %v540_v34  ;;  %v332_v53 = vmax.f32 %v232_v36, %v300_v41  ;;  %v400_v54 = vmin.f32 %v364_v31, %v1934_v38  ;;  %v382_v19 = vld [vmem:[#allocation7 + $0x318] sm:$0xff] }
  0x73   :  { %v1603_v61 = vpack.c.bf16 %v720_v47, %v713_v46  ;;  %v333_v62 = vmax.f32 %v233_v48, %v301_v42  ;;  %v401_v63 = vmin.f32 %v365_v43, %v1934_v38  ;;  %v600_v2 = vsub.f32 %v2014_v44, %v2498_v26  ;;  %v98_v47 = vld [vmem:[#allocation7 + $0x100] sm:$0xff]  ;;  %v185_v26 = vld [vmem:[#allocation7 + $0x368] sm:$0xff] }
  0x74   :  { %2544 = vst [vmem:[#allocation12_spill] sm:$0xff] %v2083_v51  ;;  %1580 = vmatprep.subr.bf16.mxu0 %v2083_v51  ;;  %v432_v5 = vmax.f32 %v332_v53, %v400_v54  ;;  %v2497_v8 = vand.u32 4294901760, %v2019_v13  ;;  %v150_v9 = vmin.f32 %v114_v49, %v1928_v32  ;;  %v151_v18 = vmin.f32 %v115_v25, %v1928_v32  ;;  %v99_v54 = vld [vmem:[#allocation7 + $0x120] sm:$0xff] }
  0x75   :  { %1604 = vmatprep.subr.bf16.mxu1 %v1603_v61  ;;  %v433_v20 = vmax.f32 %v333_v62, %v401_v63  ;;  %v601_v21 = vand.u32 4294901760, %v600_v2  ;;  %v218_v27 = vmin.f32 %v182_v59, %v1930_v33  ;;  %v219_v28 = vmin.f32 %v183_v60, %v1930_v33  ;;  %v166_v59 = vld [vmem:[#allocation7 + $0x108] sm:$0xff] }
  0x76   :  { %v489_v30 = vand.u32 4294901760, %v432_v5  ;;  %v607_v31 = vsub.f32 %v2019_v13, %v2497_v8  ;;  %v318_v34 = vmin.f32 %v282_v3, %v1932_v35  ;;  %v319_v36 = vmin.f32 %v283_v4, %v1932_v35  ;;  %v167_v2 = vld [vmem:[#allocation7 + $0x128] sm:$0xff]  ;;  %v266_v3 = vld [vmem:[#allocation7 + $0x110] sm:$0xff] }
  0x77   :  { %v492_v41 = vand.u32 4294901760, %v433_v20  ;;  %v250_v42 = vmax.f32 %v150_v9, %v218_v27  ;;  %v251_v43 = vmax.f32 %v151_v18, %v219_v28  ;;  %v418_v46 = vmin.f32 %v382_v19, %v1934_v38  ;;  %v267_v19 = vld [vmem:[#allocation7 + $0x130] sm:$0xff] }
  0x78   :  { %v2104_v48 = vsub.f32 %v432_v5, %v489_v30  ;;  %v608_v49 = vand.u32 4294901760, %v607_v31  ;;  %v419_v25 = vmin.f32 %v383_v29, %v1934_v38  ;;  %v2511_v53 = vand.u32 4294901760, %v2038_v16  ;;  %v367_v31 = vld [vmem:[#allocation7 + $0x138] sm:$0xff] }
  0x79   :  { %v2108_v60 = vpack.c.bf16 %v492_v41, %v489_v30  ;;  %v2110_v61 = vsub.f32 %v433_v20, %v492_v41  ;;  %v350_v62 = vmax.f32 %v250_v42, %v318_v34  ;;  %v351_v63 = vmax.f32 %v251_v43, %v319_v36  ;;  %v366_v30 = vld [vmem:[#allocation7 + $0x118] sm:$0xff] }
  0x7a   :  { %v1605_v4 = vpack.c.bf16 %v608_v49, %v601_v21  ;;  %v726_v5 = vsub.f32 %v2038_v16, %v2511_v53  ;;  %v2509_v9 = vand.u32 4294901760, %v2040_v17  ;;  %v134_v18 = vmin.f32 %v98_v47, %v1928_v32  ;;  %v170_v53 = vld [vmem:[#allocation7 + $0x188] sm:$0xff] }
  0x7b   :  { %2545 = vst [vmem:[#allocation13_spill] sm:$0xff] %v2108_v60  ;;  %1582 = vmatpush3.bf16.msra.mxu0 %v2108_v60  ;;  %v450_v27 = vmax.f32 %v350_v62, %v418_v46  ;;  %v451_v28 = vmax.f32 %v351_v63, %v419_v25  ;;  %v135_v20 = vmin.f32 %v99_v54, %v1928_v32  ;;  %v116_v62 = vld [vmem:[#allocation7 + $0x340] sm:$0xff]  ;;  %v172_v60 = vld [vmem:[#allocation7 + $0x1c8] sm:$0xff] }
  0x7c   :  { %v202_v29 = vmin.f32 %v166_v59, %v1930_v33  ;;  %1606 = vmatpush3.bf16.msra.mxu1 %v1605_v4  ;;  %v727_v21 = vand.u32 4294901760, %v726_v5  ;;  %v733_v34 = vsub.f32 %v2040_v17, %v2509_v9  ;;  %v203_v36 = vmin.f32 %v167_v2, %v1930_v33  ;;  %v117_v63 = vld [vmem:[#allocation7 + $0x360] sm:$0xff]  ;;  %v184_v4 = vld [vmem:[#allocation7 + $0x348] sm:$0xff] }
  0x7d   :  { %v302_v41 = vmin.f32 %v266_v3, %v1932_v35  ;;  %v543_v42 = vand.u32 4294901760, %v450_v27  ;;  %v546_v43 = vand.u32 4294901760, %v451_v28  ;;  %v303_v47 = vmin.f32 %v267_v19, %v1932_v35 }
  0x7e   :  { %v234_v46 = vmax.f32 %v134_v18, %v202_v29  ;;  %v734_v49 = vand.u32 4294901760, %v733_v34  ;;  %v235_v25 = vmax.f32 %v135_v20, %v203_v36  ;;  %v402_v54 = vmin.f32 %v366_v30, %v1934_v38  ;;  %v284_v30 = vld [vmem:[#allocation7 + $0x350] sm:$0xff] }
  0x7f   :  { %v403_v59 = vmin.f32 %v367_v31, %v1934_v38  ;;  %v2128_v5 = vpack.c.bf16 %v546_v43, %v543_v42  ;;  %v2130_v8 = vsub.f32 %v450_v27, %v543_v42  ;;  %v2132_v2 = vsub.f32 %v451_v28, %v546_v43  ;;  %v285_v34 = vld [vmem:[#allocation7 + $0x370] sm:$0xff] }
  0x80   :  { %v334_v3 = vmax.f32 %v234_v46, %v302_v41  ;;  %v1607_v18 = vpack.c.bf16 %v734_v49, %v727_v21  ;;  %v335_v29 = vmax.f32 %v235_v25, %v303_v47  ;;  %v2508_v19 = vand.u32 4294901760, %v2057_v55  ;;  %v384_v46 = vld [vmem:[#allocation7 + $0x358] sm:$0xff] }
  0x81   :  { %2546 = vst [vmem:[#allocation14_spill] sm:$0xff] %v2128_v5  ;;  %v2506_v20 = vand.u32 4294901760, %v2063_v1  ;;  %1584 = vmatprep.subr.bf16.mxu0 %v2128_v5  ;;  %v152_v36 = vmin.f32 %v116_v62, %v1928_v32  ;;  %v153_v27 = vmin.f32 %v117_v63, %v1928_v32  ;;  %v220_v28 = vmin.f32 %v184_v4, %v1930_v33  ;;  %v385_v47 = vld [vmem:[#allocation7 + $0x378] sm:$0xff]  ;;  %v189_v5 = vld [vmem:[#allocation7 + $0x3e8] sm:$0xff] }
  0x82   :  { %v434_v31 = vmax.f32 %v334_v3, %v402_v54  ;;  %1608 = vmatprep.subr.bf16.mxu1 %v1607_v18  ;;  %v435_v41 = vmax.f32 %v335_v29, %v403_v59  ;;  %v614_v21 = vsub.f32 %v2057_v55, %v2508_v19  ;;  %v221_v43 = vmin.f32 %v185_v26, %v1930_v33  ;;  %v100_v18 = vld [vmem:[#allocation7 + $0x140] sm:$0xff] }
  0x83   :  { %v621_v42 = vsub.f32 %v2063_v1, %v2506_v20  ;;  %v252_v25 = vmax.f32 %v152_v36, %v220_v28  ;;  %v320_v54 = vmin.f32 %v284_v30, %v1932_v35  ;;  %v321_v62 = vmin.f32 %v285_v34, %v1932_v35  ;;  %v169_v28 = vld [vmem:[#allocation7 + $0x168] sm:$0xff] }
  0x84   :  { %v495_v49 = vand.u32 4294901760, %v434_v31  ;;  %v498_v63 = vand.u32 4294901760, %v435_v41  ;;  %v615_v59 = vand.u32 4294901760, %v614_v21  ;;  %v253_v3 = vmax.f32 %v153_v27, %v221_v43  ;;  %v268_v43 = vld [vmem:[#allocation7 + $0x150] sm:$0xff] }
  0x85   :  { %v622_v4 = vand.u32 4294901760, %v621_v42  ;;  %v352_v7 = vmax.f32 %v252_v25, %v320_v54  ;;  %v420_v6 = vmin.f32 %v384_v46, %v1934_v38  ;;  %v421_v26 = vmin.f32 %v385_v47, %v1934_v38  ;;  %v269_v46 = vld [vmem:[#allocation7 + $0x170] sm:$0xff] }
  0x86   :  { %v2149_v29 = vsub.f32 %v434_v31, %v495_v49  ;;  %v2153_v14 = vpack.c.bf16 %v498_v63, %v495_v49  ;;  %v2155_v36 = vsub.f32 %v435_v41, %v498_v63  ;;  %v353_v34 = vmax.f32 %v253_v3, %v321_v62  ;;  %v368_v63 = vld [vmem:[#allocation7 + $0x158] sm:$0xff] }
  0x87   :  { %v1609_v30 = vpack.c.bf16 %v622_v4, %v615_v59  ;;  %v452_v21 = vmax.f32 %v352_v7, %v420_v6  ;;  %v2505_v27 = vand.u32 4294901760, %v2081_v45  ;;  %v2507_v31 = vand.u32 4294901760, %v2085_v52  ;;  %v369_v3 = vld [vmem:[#allocation7 + $0x178] sm:$0xff] }
  0x88   :  { %2547 = vst [vmem:[#allocation15_spill] sm:$0xff] %v2153_v14  ;;  %v136_v42 = vmin.f32 %v100_v18, %v1928_v32  ;;  %1586 = vmatpush3.bf16.msra.mxu0 %v2153_v14  ;;  %v453_v47 = vmax.f32 %v353_v34, %v421_v26  ;;  %v137_v49 = vmin.f32 %v101_v23, %v1928_v32  ;;  %v2510_v25 = vand.u32 4294901760, %v2104_v48 }
  0x89   :  { %1610 = vmatpush3.bf16.msra.mxu1 %v1609_v30  ;;  %v204_v41 = vmin.f32 %v168_v22, %v1930_v33  ;;  %v549_v54 = vand.u32 4294901760, %v452_v21  ;;  %v740_v6 = vsub.f32 %v2081_v45, %v2505_v27  ;;  %v747_v7 = vsub.f32 %v2085_v52, %v2507_v31  ;;  %v119_v27 = vld [vmem:[#allocation7 + $0x3a0] sm:$0xff] }
  0x8a   :  { %v205_v62 = vmin.f32 %v169_v28, %v1930_v33  ;;  %v552_v59 = vand.u32 4294901760, %v453_v47  ;;  %v304_v23 = vmin.f32 %v268_v43, %v1932_v35  ;;  %v305_v22 = vmin.f32 %v269_v46, %v1932_v35 }
  0x8b   :  { %v236_v4 = vmax.f32 %v136_v42, %v204_v41  ;;  %v2173_v18 = vsub.f32 %v452_v21, %v549_v54  ;;  %v741_v26 = vand.u32 4294901760, %v740_v6  ;;  %v748_v30 = vand.u32 4294901760, %v747_v7  ;;  %v186_v42 = vld [vmem:[#allocation7 + $0x388] sm:$0xff]  ;;  %v287_v6 = vld [vmem:[#allocation7 + $0x3b0] sm:$0xff] }
  0x8c   :  { %v237_v34 = vmax.f32 %v137_v49, %v205_v62  ;;  %v2175_v20 = vpack.c.bf16 %v552_v59, %v549_v54  ;;  %v2177_v31 = vsub.f32 %v453_v47, %v552_v59  ;;  %v404_v19 = vmin.f32 %v368_v63, %v1934_v38  ;;  %v187_v41 = vld [vmem:[#allocation7 + $0x3a8] sm:$0xff]  ;;  %v286_v49 = vld [vmem:[#allocation7 + $0x390] sm:$0xff]  ;;  %v386_v63 = vld [vmem:[#allocation7 + $0x398] sm:$0xff] }
  0x8d   :  { %v336_v28 = vmax.f32 %v236_v4, %v304_v23  ;;  %v1611_v43 = vpack.c.bf16 %v748_v30, %v741_v26  ;;  %v405_v46 = vmin.f32 %v369_v3, %v1934_v38  ;;  %v628_v21 = vsub.f32 %v2104_v48, %v2510_v25  ;;  %v387_v3 = vld [vmem:[#allocation7 + $0x3b8] sm:$0xff]  ;;  %v103_v25 = vld [vmem:[#allocation7 + $0x1a0] sm:$0xff] }
  0x8e   :  { %2548 = vst [vmem:[#allocation16_spill] sm:$0xff] %v2175_v20  ;;  %v337_v9 = vmax.f32 %v237_v34, %v305_v22  ;;  %1588 = vmatprep.subr.bf16.mxu0 %v2175_v20  ;;  %v2512_v47 = vand.u32 4294901760, %v2110_v61  ;;  %v154_v7 = vmin.f32 %v118_v24, %v1928_v32  ;;  %v155_v62 = vmin.f32 %v119_v27, %v1928_v32 }
  0x8f   :  { %v436_v54 = vmax.f32 %v336_v28, %v404_v19  ;;  %1612 = vmatprep.subr.bf16.mxu1 %v1611_v43  ;;  %v629_v4 = vand.u32 4294901760, %v628_v21  ;;  %v222_v23 = vmin.f32 %v186_v42, %v1930_v33  ;;  %v223_v22 = vmin.f32 %v187_v41, %v1930_v33  ;;  %v102_v43 = vld [vmem:[#allocation7 + $0x180] sm:$0xff] }
  0x90   :  { %v437_v59 = vmax.f32 %v337_v9, %v405_v46  ;;  %v635_v19 = vsub.f32 %v2110_v61, %v2512_v47  ;;  %v322_v30 = vmin.f32 %v286_v49, %v1932_v35  ;;  %v323_v24 = vmin.f32 %v287_v6, %v1932_v35 }
  0x91   :  { %v501_v26 = vand.u32 4294901760, %v436_v54  ;;  %v254_v27 = vmax.f32 %v154_v7, %v222_v23  ;;  %v255_v28 = vmax.f32 %v155_v62, %v223_v22  ;;  %v422_v9 = vmin.f32 %v386_v63, %v1934_v38  ;;  %v171_v7 = vld [vmem:[#allocation7 + $0x1a8] sm:$0xff]  ;;  %v270_v62 = vld [vmem:[#allocation7 + $0x190] sm:$0xff] }
  0x92   :  { %v504_v34 = vand.u32 4294901760, %v437_v59  ;;  %v636_v42 = vand.u32 4294901760, %v635_v19  ;;  %v423_v41 = vmin.f32 %v387_v3, %v1934_v38  ;;  %v2515_v21 = vand.u32 4294901760, %v2130_v8  ;;  %v271_v3 = vld [vmem:[#allocation7 + $0x1b0] sm:$0xff] }
  0x93   :  { %v2196_v46 = vsub.f32 %v436_v54, %v501_v26  ;;  %v354_v6 = vmax.f32 %v254_v27, %v322_v30  ;;  %v355_v20 = vmax.f32 %v255_v28, %v323_v24  ;;  %v2520_v63 = vand.u32 4294901760, %v2132_v2  ;;  %v370_v24 = vld [vmem:[#allocation7 + $0x198] sm:$0xff] }
  0x94   :  { %v2200_v47 = vpack.c.bf16 %v504_v34, %v501_v26  ;;  %v2202_v49 = vsub.f32 %v437_v59, %v504_v34  ;;  %v1613_v23 = vpack.c.bf16 %v636_v42, %v629_v4  ;;  %v754_v54 = vsub.f32 %v2130_v8, %v2515_v21  ;;  %v371_v34 = vld [vmem:[#allocation7 + $0x1b8] sm:$0xff] }
  0x95   :  { %v138_v22 = vmin.f32 %v102_v43, %v1928_v32  ;;  %v454_v26 = vmax.f32 %v354_v6, %v422_v9  ;;  %v455_v19 = vmax.f32 %v355_v20, %v423_v41  ;;  %v139_v59 = vmin.f32 %v103_v25, %v1928_v32 }
  0x96   :  { %2549 = vst [vmem:[#allocation17_spill] sm:$0xff] %v2200_v47  ;;  %1590 = vmatpush3.bf16.msra.mxu0 %v2200_v47  ;;  %v206_v30 = vmin.f32 %v170_v53, %v1930_v33  ;;  %1614 = vmatpush3.bf16.msra.mxu1 %v1613_v23  ;;  %v755_v4 = vand.u32 4294901760, %v754_v54  ;;  %v761_v27 = vsub.f32 %v2132_v2, %v2520_v63  ;;  %v120_v23 = vld [vmem:[#allocation7 + $0x3c0] sm:$0xff]  ;;  %v188_v47 = vld [vmem:[#allocation7 + $0x3c8] sm:$0xff] }
  0x97   :  { %v207_v28 = vmin.f32 %v171_v7, %v1930_v33  ;;  %v306_v43 = vmin.f32 %v270_v62, %v1932_v35  ;;  %v555_v42 = vand.u32 4294901760, %v454_v26  ;;  %v558_v21 = vand.u32 4294901760, %v455_v19  ;;  %v121_v54 = vld [vmem:[#allocation7 + $0x3e0] sm:$0xff] }
  0x98   :  { %v238_v9 = vmax.f32 %v138_v22, %v206_v30  ;;  %v307_v20 = vmin.f32 %v271_v3, %v1932_v35  ;;  %v762_v25 = vand.u32 4294901760, %v761_v27  ;;  %v406_v53 = vmin.f32 %v370_v24, %v1934_v38  ;;  %v288_v24 = vld [vmem:[#allocation7 + $0x3d0] sm:$0xff] }
  0x99   :  { %v239_v41 = vmax.f32 %v139_v59, %v207_v28  ;;  %v407_v6 = vmin.f32 %v371_v34, %v1934_v38  ;;  %v2220_v14 = vpack.c.bf16 %v558_v21, %v555_v42  ;;  %v2222_v63 = vsub.f32 %v454_v26, %v555_v42  ;;  %v289_v27 = vld [vmem:[#allocation7 + $0x3f0] sm:$0xff] }
  0x9a   :  { %v2224_v7 = vsub.f32 %v455_v19, %v558_v21  ;;  %v338_v62 = vmax.f32 %v238_v9, %v306_v43  ;;  %v1615_v22 = vpack.c.bf16 %v762_v25, %v755_v4  ;;  %v2523_v3 = vand.u32 4294901760, %v2149_v29  ;;  %v388_v9 = vld [vmem:[#allocation7 + $0x3d8] sm:$0xff] }
  0x9b   :  { %2550 = vst [vmem:[#allocation18_spill] sm:$0xff] %v2220_v14  ;;  %v339_v30 = vmax.f32 %v239_v41, %v307_v20  ;;  %v2524_v59 = vand.u32 4294901760, %v2155_v36  ;;  %1592 = vmatprep.subr.bf16.mxu0 %v2220_v14  ;;  %v156_v28 = vmin.f32 %v120_v23, %v1928_v32  ;;  %v157_v26 = vmin.f32 %v121_v54, %v1928_v32  ;;  %v389_v20 = vld [vmem:[#allocation7 + $0x3f8] sm:$0xff]  ;;  %v105_v14 = vld [vmem:[#allocation7 + $0x1e0] sm:$0xff] }
  0x9c   :  { %v438_v34 = vmax.f32 %v338_v62, %v406_v53  ;;  %v224_v21 = vmin.f32 %v188_v47, %v1930_v33  ;;  %1616 = vmatprep.subr.bf16.mxu1 %v1615_v22  ;;  %v642_v4 = vsub.f32 %v2149_v29, %v2523_v3  ;;  %v225_v42 = vmin.f32 %v189_v5, %v1930_v33  ;;  %v104_v22 = vld [vmem:[#allocation7 + $0x1c0] sm:$0xff] }
  0x9d   :  { %v439_v19 = vmax.f32 %v339_v30, %v407_v6  ;;  %v649_v43 = vsub.f32 %v2155_v36, %v2524_v59  ;;  %v324_v53 = vmin.f32 %v288_v24, %v1932_v35  ;;  %v325_v47 = vmin.f32 %v289_v27, %v1932_v35 }
  0x9e   :  { %v507_v25 = vand.u32 4294901760, %v438_v34  ;;  %v256_v41 = vmax.f32 %v156_v28, %v224_v21  ;;  %v643_v6 = vand.u32 4294901760, %v642_v4  ;;  %v257_v62 = vmax.f32 %v157_v26, %v225_v42  ;;  %v173_v21 = vld [vmem:[#allocation7 + $0x1e8] sm:$0xff]  ;;  %v272_v42 = vld [vmem:[#allocation7 + $0x1d0] sm:$0xff] }
  0x9f   :  { %v510_v23 = vand.u32 4294901760, %v439_v19  ;;  %v650_v54 = vand.u32 4294901760, %v649_v43  ;;  %v424_v59 = vmin.f32 %v388_v9, %v1934_v38  ;;  %v425_v5 = vmin.f32 %v389_v20, %v1934_v38  ;;  %v273_v9 = vld [vmem:[#allocation7 + $0x1f0] sm:$0xff] }
  0xa0   :  { %v2241_v30 = vsub.f32 %v438_v34, %v507_v25  ;;  %v356_v3 = vmax.f32 %v256_v41, %v324_v53  ;;  %v357_v27 = vmax.f32 %v257_v62, %v325_v47  ;;  %v2541_v26 = vand.u32 4294901760, %v2173_v18 }
  0xa1   :  { %v2245_v51 = vpack.c.bf16 %v510_v23, %v507_v25  ;;  %v2247_v28 = vsub.f32 %v439_v19, %v510_v23  ;;  %v1617_v24 = vpack.c.bf16 %v650_v54, %v643_v6  ;;  %v2531_v34 = vand.u32 4294901760, %v2177_v31  ;;  %v372_v23 = vld [vmem:[#allocation7 + $0x1d8] sm:$0xff] }
  0xa2   :  { %v456_v4 = vmax.f32 %v356_v3, %v424_v59  ;;  %v140_v43 = vmin.f32 %v104_v22, %v1928_v32  ;;  %v457_v20 = vmax.f32 %v357_v27, %v425_v5  ;;  %v141_v25 = vmin.f32 %v105_v14, %v1928_v32  ;;  %v1356_v27 = vld.sshfl [vmem:[%s2495_s3] sm:$0x33 pattern:$0x76325410]  ;;  %s1866_s3 = smov [#allocation8]  }
  0xa3   :  { %1594 = vmatpush3.bf16.msra.mxu0 %v2245_v51  ;;  %1618 = vmatpush3.bf16.msra.mxu1 %v1617_v24  ;;  %v208_v19 = vmin.f32 %v172_v60, %v1930_v33  ;;  %v2536_v41 = vand.u32 4294901760, %v2196_v46  ;;  %v768_v3 = vsub.f32 %v2173_v18, %v2541_v26  ;;  %v775_v59 = vsub.f32 %v2177_v31, %v2531_v34  ;;  %v373_v60 = vld [vmem:[#allocation7 + $0x1f8] sm:$0xff]  ;;  %s1346_s26 = sshll.u32 %s1866_s3, 4  ;;  %s1347_s26 = int_to_ptr.vmem [resolvable:$true] %s1346_s26 }
  0xa4   :  { %v561_v53 = vand.u32 4294901760, %v456_v4  ;;  %v209_v47 = vmin.f32 %v173_v21, %v1930_v33  ;;  %v564_v6 = vand.u32 4294901760, %v457_v20  ;;  %v308_v32 = vmin.f32 %v272_v42, %v1932_v35  ;;  %s1833_s27 = scalar_lea.vmem %s1347_s26, 16  ;;  %s1837_s28 = scalar_lea.vmem %s1347_s26, 32 }
  0xa5   :  { %v240_v54 = vmax.f32 %v140_v43, %v208_v19  ;;  %v309_v14 = vmin.f32 %v273_v9, %v1932_v35  ;;  %v769_v22 = vand.u32 4294901760, %v768_v3  ;;  %v776_v5 = vand.u32 4294901760, %v775_v59  ;;  %p1834_p10 = scmp.ne.s32.totalorder %s1347_s26, %s1833_s27  ;;  %p1838_p11 = scmp.lt.s32.totalorder %s1347_s26, %s1347_s26 }
  0xa6   :  { %v2265_v62 = vsub.f32 %v456_v4, %v561_v53  ;;  %v241_v24 = vmax.f32 %v141_v25, %v209_v47  ;;  %v2270_v34 = vpack.c.bf16 %v564_v6, %v561_v53  ;;  %v2272_v33 = vsub.f32 %v457_v20, %v564_v6  ;;  %p1839_p12 = scmp.lt.s32.totalorder %s1837_s28, %s1833_s27 }
  0xa7   :  { %v340_v21 = vmax.f32 %v240_v54, %v308_v32  ;;  %v408_v43 = vmin.f32 %v372_v23, %v1934_v38  ;;  %v1619_v42 = vpack.c.bf16 %v776_v5, %v769_v22  ;;  %v409_v35 = vmin.f32 %v373_v60, %v1934_v38 }
  0xa8   :  { %v341_v19 = vmax.f32 %v241_v24, %v309_v14  ;;  %v656_v4 = vsub.f32 %v2196_v46, %v2536_v41  ;;  %1596 = vmatprep.subr.bf16.mxu0 %v2270_v34  ;;  %v2534_v25 = vand.u32 4294901760, %v2202_v49  ;;  %v467_v53 = vcombine.high %v1356_v27, %v1356_v27  ;;  %p1840_p13 = por %p1839_p12, %p1838_p11 }
  0xa9   :  { %v440_v9 = vmax.f32 %v340_v21, %v408_v43  ;;  %v2281_v3 = vand.u32 4294901760, %v1356_v27  ;;  %1620 = vmatprep.subr.bf16.mxu1 %v1619_v42  ;;  %v2532_v47 = vand.u32 4294901760, %v2222_v63  ;;  %v2533_v23 = vand.u32 4294901760, %v2224_v7 }
  0xaa   :  { %v441_v20 = vmax.f32 %v341_v19, %v409_v35  ;;  %v657_v59 = vand.u32 4294901760, %v656_v4  ;;  %v663_v6 = vsub.f32 %v2202_v49, %v2534_v25  ;;  %v2288_v54 = vand.u32 4294901760, %v467_v53  ;;  %p1841_p0 = pnand %p1840_p13, %p1834_p10 }
  0xab   :  { %v513_v38 = vand.u32 4294901760, %v440_v9  ;;  %v1631_v32 = vpack.c.bf16 %v2011_v39, %v2006_v37  ;;  %v782_v60 = vsub.f32 %v2222_v63, %v2532_v47  ;;  %v789_v22 = vsub.f32 %v2224_v7, %v2533_v23 }
  0xac   :  { %v516_v14 = vand.u32 4294901760, %v441_v20  ;;  %v2299_v5 = vsub.f32 %v1356_v27, %v2281_v3  ;;  %v664_v21 = vand.u32 4294901760, %v663_v6  ;;  %v2304_v43 = vsub.f32 %v467_v53, %v2288_v54  ;;  %807 = vmatprep.mubr.f32.mxu1 %v2288_v54 }
  0xad   :  { %v2301_v24 = vsub.f32 %v440_v9, %v513_v38  ;;  %v2535_v42 = vand.u32 4294901760, %v2241_v30  ;;  %v783_v4 = vand.u32 4294901760, %v782_v60  ;;  %v790_v47 = vand.u32 4294901760, %v789_v22 }
  0xae   :  { %v2308_v19 = vpack.c.bf16 %v516_v14, %v513_v38  ;;  %v2310_v35 = vsub.f32 %v441_v20, %v516_v14  ;;  %v1621_v23 = vpack.c.bf16 %v664_v21, %v657_v59  ;;  %v568_v27 = vand.u32 4294901760, %v2304_v43 }
  0xaf   :  { %v2537_v9 = vand.u32 4294901760, %v2299_v5  ;;  %v670_v53 = vsub.f32 %v2241_v30, %v2535_v42  ;;  %v1623_v6 = vpack.c.bf16 %v790_v47, %v783_v4  ;;  %v2538_v25 = vand.u32 4294901760, %v2247_v28 }
  0xb0   :  { %2551 = vst [vmem:[#allocation19_spill] sm:$0xff] %v2308_v19  ;;  %1598 = vmatpush3.bf16.msra.mxu0 %v2308_v19  ;;  %v2539_v38 = vand.u32 4294901760, %v2265_v62  ;;  %1622 = vmatpush3.bf16.msra.mxu1 %v1621_v23  ;;  %v569_v20 = vsub.f32 %v2304_v43, %v568_v27  ;;  %v1633_v14 = vpack.c.bf16 %v1982_v58, %v1980_v57  ;;  %v2540_v60 = vand.u32 4294901760, %v2272_v33 }
  0xb1   :  { %1632 = vmatprep.subr.bf16.mxu0 %v1631_v32  ;;  %v575_v59 = vsub.f32 %v2299_v5, %v2537_v9  ;;  %1624 = vmatprep.subr.bf16.mxu1 %v1623_v6  ;;  %v671_v22 = vand.u32 4294901760, %v670_v53  ;;  %v677_v47 = vsub.f32 %v2247_v28, %v2538_v25  ;;  %v683_v32 = vand.u32 4294901760, %v2301_v24 }
  0xb2   :  { %v796_v23 = vsub.f32 %v2265_v62, %v2539_v38  ;;  %v570_v21 = vand.u32 4294901760, %v569_v20  ;;  %v803_v42 = vsub.f32 %v2272_v33, %v2540_v60  ;;  %v690_v41 = vand.u32 4294901760, %v2310_v35 }
  0xb3   :  { %v576_v4 = vand.u32 4294901760, %v575_v59  ;;  %v678_v6 = vand.u32 4294901760, %v677_v47  ;;  %v1635_v9 = vpack.c.bf16 %v1993_v12, %v1991_v11  ;;  %v684_v25 = vsub.f32 %v2301_v24, %v683_v32 }
  0xb4   :  { %v797_v53 = vand.u32 4294901760, %v796_v23  ;;  %571 = vmatprep.mubr.f32.mxu0 %v570_v21  ;;  %v804_v38 = vand.u32 4294901760, %v803_v42  ;;  %v691_v20 = vsub.f32 %v2310_v35, %v690_v41  ;;  %v1639_v59 = vpack.c.bf16 %v2040_v17, %v2038_v16 }
  0xb5   :  { %577 = vmatmul.mubr.f32.vlgmr.msra.gmra.mrb[0].mxu0 %v576_v4  ;;  %v1625_v60 = vpack.c.bf16 %v678_v6, %v671_v22  ;;  %v685_v47 = vand.u32 4294901760, %v684_v25  ;;  %v1637_v19 = vpack.c.bf16 %v2019_v13, %v2014_v44  ;;  %v1641_v21 = vpack.c.bf16 %v2063_v1, %v2057_v55 }
  0xb6   :  { %1634 = vmatpush3.bf16.msra.mxu0 %v1633_v14  ;;  %v1627_v23 = vpack.c.bf16 %v804_v38, %v797_v53  ;;  %v692_v26 = vand.u32 4294901760, %v691_v20  ;;  %944 = vmatprep.mubr.f32.mxu0 %v2304_v43  ;;  %v1643_v4 = vpack.c.bf16 %v2085_v52, %v2081_v45  ;;  %v2552_v25 = vand.u32 4294901760, %v2038_v16 }
  0xb7   :  { %1626 = vmatpush3.bf16.msra.mxu1 %v1625_v60  ;;  %1636 = vmatprep.subr.bf16.mxu0 %v1635_v9  ;;  %v2553_v38 = vand.u32 4294901760, %v2040_v17  ;;  %v2554_v22 = vand.u32 4294901760, %v2057_v55  ;;  %v2555_v43 = vand.u32 4294901760, %v2063_v1  ;;  %v2556_v9 = vand.u32 4294901760, %v2081_v45 }
  0xb8   :  { %1628 = vmatprep.subr.bf16.mxu1 %v1627_v23  ;;  %v1629_v42 = vpack.c.bf16 %v692_v26, %v685_v47  ;;  %v2557_v26 = vand.u32 4294901760, %v2085_v52  ;;  %v2558_v53 = vand.u32 4294901760, %v2104_v48  ;;  %v2559_v20 = vand.u32 4294901760, %v2110_v61 }
  0xb9   :  { %v1703_v14 = vpack.c.bf16 %v2553_v38, %v2552_v25  ;;  %v1705_v60 = vpack.c.bf16 %v2555_v43, %v2554_v22  ;;  %v2560_v16 = vand.u32 4294901760, %v2130_v8  ;;  %v2561_v17 = vand.u32 4294901760, %v2132_v2 }
  0xba   :  { %1638 = vmatpush3.bf16.msra.mxu0 %v1637_v19  ;;  %v1707_v6 = vpack.c.bf16 %v2557_v26, %v2556_v9  ;;  %v1709_v19 = vpack.c.bf16 %v2559_v20, %v2558_v53  ;;  %v2562_v1 = vand.u32 4294901760, %v2149_v29  ;;  %v2563_v47 = vand.u32 4294901760, %v2155_v36  ;;  %v2572_v9 = vld [vmem:[#allocation16_spill] sm:$0xff] }
  0xbb   :  { %1630 = vmatpush3.bf16.msra.mxu1 %v1629_v42  ;;  %1640 = vmatprep.subr.bf16.mxu0 %v1639_v59  ;;  %v1711_v55 = vpack.c.bf16 %v2561_v17, %v2560_v16  ;;  %v2564_v52 = vand.u32 4294901760, %v2173_v18  ;;  %v2565_v23 = vand.u32 4294901760, %v2177_v31  ;;  %v1645_v59 = vpack.c.bf16 %v2110_v61, %v2104_v48  ;;  %v2566_v61 = vld [vmem:[#allocation12_spill] sm:$0xff]  ;;  %v2575_v16 = vld [vmem:[#allocation17_spill] sm:$0xff] }
  0xbc   :  { %v1713_v45 = vpack.c.bf16 %v2563_v47, %v2562_v1  ;;  %1664 = vmatprep.subr.bf16.mxu1 %v1970_v40  ;;  %v1647_v42 = vpack.c.bf16 %v2132_v2, %v2130_v8  ;;  %v1649_v38 = vpack.c.bf16 %v2155_v36, %v2149_v29  ;;  %v1653_v48 = vpack.c.bf16 %v2202_v49, %v2196_v46  ;;  %v2567_v29 = vld [vmem:[#allocation13_spill] sm:$0xff] }
  0xbd   :  { %v2383_v25 = vpack.c.bf16 %v2565_v23, %v2564_v52  ;;  %v1655_v8 = vpack.c.bf16 %v2224_v7, %v2222_v63  ;;  %v1657_v2 = vpack.c.bf16 %v2247_v28, %v2241_v30  ;;  %v1659_v36 = vpack.c.bf16 %v2272_v33, %v2265_v62 }
  0xbe   :  { %809 = vmatmul.mubr.f32.vlgmr.msra.gmra.mrb[0].mxu1 %v2281_v3  ;;  %1642 = vmatpush3.bf16.msra.mxu0 %v1641_v21  ;;  %v1651_v21 = vpack.c.bf16 %v2177_v31, %v2173_v18  ;;  %v2568_v31 = vld [vmem:[#allocation14_spill] sm:$0xff]  ;;  %v1661_v18 = vpack.c.bf16 %v2310_v35, %v2301_v24  ;;  %v2571_v22 = vand.u32 4294901760, %v2011_v39  ;;  %v2573_v26 = vand.u32 4294901760, %v1980_v57 }
  0xbf   :  { %1666 = vmatpush3.bf16.msra.mxu1 %v1978_v56  ;;  %1644 = vmatprep.subr.bf16.mxu0 %v1643_v4  ;;  %v2570_v4 = vand.u32 4294901760, %v2006_v37  ;;  %v2574_v53 = vand.u32 4294901760, %v1982_v58  ;;  %v2576_v17 = vand.u32 4294901760, %v1991_v11  ;;  %v2577_v1 = vand.u32 4294901760, %v1993_v12  ;;  %v2578_v37 = vld [vmem:[#allocation18_spill] sm:$0xff]  ;;  %v2581_v58 = vld [vmem:[#allocation19_spill] sm:$0xff] }
  0xc0   :  { %1668 = vmatprep.subr.bf16.mxu1 %v1989_v10  ;;  %1051 = vmatprep.mubr.f32.mxu1 %v568_v27  ;;  %v2569_v27 = vld [vmem:[#allocation15_spill] sm:$0xff]  ;;  %v2579_v39 = vand.u32 4294901760, %v2014_v44  ;;  %v2580_v57 = vand.u32 4294901760, %v2019_v13  ;;  %v2582_v11 = vand.u32 4294901760, %v2299_v5  ;;  %v2584_v12 = vand.u32 4294901760, %v2202_v49 }
  0xc1   :  { %v1695_v43 = vpack.c.bf16 %v2571_v22, %v2570_v4  ;;  %v1697_v20 = vpack.c.bf16 %v2574_v53, %v2573_v26  ;;  %v1699_v47 = vpack.c.bf16 %v2577_v1, %v2576_v17  ;;  %v2590_v49 = vand.u32 4294901760, %v2272_v33 }
  0xc2   :  { %1646 = vmatpush3.bf16.msra.mxu0 %v1645_v59  ;;  %v1701_v52 = vpack.c.bf16 %v2580_v57, %v2579_v39 }
  0xc3   :  { %1670 = vmatpush3.bf16.msra.mxu1 %v2017_v50  ;;  %1648 = vmatprep.subr.bf16.mxu0 %v1647_v42 }
  0xc4   :  { %1672 = vmatprep.subr.bf16.mxu1 %v2036_v15 }
  0xc6   :  { %1650 = vmatpush3.bf16.msra.mxu0 %v1649_v38 }
  0xc7   :  { %1674 = vmatpush3.bf16.msra.mxu1 %v2061_v0  ;;  %1652 = vmatprep.subr.bf16.mxu0 %v1651_v21 }
  0xc8   :  { %1676 = vmatprep.subr.bf16.mxu1 %v2566_v61 }
  0xca   :  { %1654 = vmatpush3.bf16.msra.mxu0 %v1653_v48 }
  0xcb   :  { %1678 = vmatpush3.bf16.msra.mxu1 %v2567_v29  ;;  %1656 = vmatprep.subr.bf16.mxu0 %v1655_v8 }
  0xcc   :  { %1680 = vmatprep.subr.bf16.mxu1 %v2568_v31 }
  0xce   :  { %1658 = vmatpush3.bf16.msra.mxu0 %v1657_v2 }
  0xcf   :  { %1682 = vmatpush3.bf16.msra.mxu1 %v2569_v27  ;;  %1660 = vmatprep.subr.bf16.mxu0 %v1659_v36 }
  0xd0   :  { %1684 = vmatprep.subr.bf16.mxu1 %v2572_v9 }
  0xd2   :  { %1662 = vmatpush3.bf16.msra.mxu0 %v1661_v18 }
  0xd3   :  { %1686 = vmatpush3.bf16.msra.mxu1 %v2575_v16  ;;  %1696 = vmatprep.subr.bf16.mxu0 %v1695_v43 }
  0xd4   :  { %1688 = vmatprep.subr.bf16.mxu1 %v2578_v37 }
  0xd5   :  { %947 = vmatmul.mubr.f32.vlgmr.msra.gmra.mrb[2].mxu0 %v2299_v5 }
  0xd6   :  { %1698 = vmatpush3.bf16.msra.mxu0 %v1697_v20  ;;  %1221 = vmatprep.mubr.f32.mxu0 %v2288_v54 }
  0xd7   :  { %1690 = vmatpush3.bf16.msra.mxu1 %v2245_v51  ;;  %1700 = vmatprep.subr.bf16.mxu0 %v1699_v47 }
  0xd8   :  { %1692 = vmatprep.subr.bf16.mxu1 %v2270_v34 }
  0xda   :  { %1702 = vmatpush3.bf16.msra.mxu0 %v1701_v52 }
  0xdb   :  { %1694 = vmatpush3.bf16.msra.mxu1 %v2581_v58  ;;  %1704 = vmatprep.subr.bf16.mxu0 %v1703_v14 }
  0xdc   :  { %1728 = vmatprep.subr.bf16.mxu1 %v1970_v40  ;;  %v2583_v40 = vand.u32 4294901760, %v2196_v46 }
  0xde   :  { %1055 = vmatmul.mubr.f32.vlgmr.msra.gmra.mrb[2].mxu1 %v2582_v11  ;;  %1706 = vmatpush3.bf16.msra.mxu0 %v1705_v60  ;;  %v1717_v44 = vpack.c.bf16 %v2584_v12, %v2583_v40 }
  0xdf   :  { %1730 = vmatpush3.bf16.msra.mxu1 %v1978_v56  ;;  %1708 = vmatprep.subr.bf16.mxu0 %v1707_v6  ;;  %v2585_v56 = vand.u32 4294901760, %v2222_v63  ;;  %v1725_v63 = vpack.c.bf16 %v690_v41, %v683_v32 }
  0xe0   :  { %1732 = vmatprep.subr.bf16.mxu1 %v1989_v10  ;;  %1325 = vmatprep.mubr.f32.mxu1 %v2288_v54  ;;  %v2586_v10 = vand.u32 4294901760, %v2224_v7 }
  0xe2   :  { %1710 = vmatpush3.bf16.msra.mxu0 %v1709_v19  ;;  %v1719_v13 = vpack.c.bf16 %v2586_v10, %v2585_v56 }
  0xe3   :  { %1734 = vmatpush3.bf16.msra.mxu1 %v2017_v50  ;;  %1712 = vmatprep.subr.bf16.mxu0 %v1711_v55  ;;  %v2587_v50 = vand.u32 4294901760, %v2241_v30 }
  0xe4   :  { %1736 = vmatprep.subr.bf16.mxu1 %v2036_v15  ;;  %v2588_v15 = vand.u32 4294901760, %v2247_v28 }
  0xe6   :  { %1714 = vmatpush3.bf16.msra.mxu0 %v1713_v45  ;;  %v1721_v46 = vpack.c.bf16 %v2588_v15, %v2587_v50 }
  0xe7   :  { %1738 = vmatpush3.bf16.msra.mxu1 %v2061_v0  ;;  %1716 = vmatprep.subr.bf16.mxu0 %v2383_v25  ;;  %v2589_v0 = vand.u32 4294901760, %v2265_v62 }
  0xe8   :  { %1740 = vmatprep.subr.bf16.mxu1 %v2566_v61 }
  0xe9   :  { %v1723_v54 = vpack.c.bf16 %v2590_v49, %v2589_v0 }
  0xea   :  { %1718 = vmatpush3.bf16.msra.mxu0 %v1717_v44 }
  0xeb   :  { %1742 = vmatpush3.bf16.msra.mxu1 %v2567_v29  ;;  %1720 = vmatprep.subr.bf16.mxu0 %v1719_v13 }
  0xec   :  { %1744 = vmatprep.subr.bf16.mxu1 %v2568_v31 }
  0xee   :  { %1722 = vmatpush3.bf16.msra.mxu0 %v1721_v46 }
  0xef   :  { %1746 = vmatpush3.bf16.msra.mxu1 %v2569_v27  ;;  %1724 = vmatprep.subr.bf16.mxu0 %v1723_v54 }
  0xf0   :  { %1748 = vmatprep.subr.bf16.mxu1 %v2572_v9 }
  0xf2   :  { %1726 = vmatpush3.bf16.msra.mxu0 %v1725_v63 }
  0xf3   :  { %1750 = vmatpush3.bf16.msra.mxu1 %v2575_v16 }
  0xf4   :  { %1752 = vmatprep.subr.bf16.mxu1 %v2578_v37 }
  0xf5   :  { %1223 = vmatmul.mubr.f32.vlgmr.msra.gmra.mrb[4].mxu0 %v2281_v3 }
  0xf7   :  { %1754 = vmatpush3.bf16.msra.mxu1 %v2245_v51 }
  0xf8   :  { %1756 = vmatprep.subr.bf16.mxu1 %v2270_v34 }
  0xfb   :  { %1758 = vmatpush3.bf16.msra.mxu1 %v2581_v58 }
  0xfe   :  { %1327 = vmatmul.mubr.f32.vlgmr.msra.gmra.mrb[4].mxu1 %v2281_v3 }
 0x188   :  { %v1389_v7 = vpop.f32.mrb[0].mxu0 }
 0x189   :  { %v1390_v30 = vpop.f32.mrb[1].mxu0 }
 0x18a   :  { %v1391_v28 = vadd.f32 %v1390_v30, %v1389_v7 }
 0x191   :  { %v1424_v41 = vpop.f32.mrb[0].mxu1 }
 0x192   :  { %v1425_v62 = vpop.f32.mrb[1].mxu1 }
 0x193   :  { %v1426_v33 = vadd.f32 %v1425_v62, %v1424_v41 }
 0x195   :  { %v811_v5 = vadd.f32 %v1426_v33, %v1391_v28 }
 0x1a8   :  { %v1459_v24 = vpop.f32.mrb[2].mxu0 }
 0x1a9   :  { %v1460_v35 = vpop.f32.mrb[3].mxu0 }
 0x1aa   :  { %v1461_v32 = vadd.f32 %v1460_v35, %v1459_v24 }
 0x1ac   :  { %v949_v14 = vadd.f32 %v1461_v32, %v811_v5 }
 0x1b1   :  { %v1494_v60 = vpop.f32.mrb[2].mxu1 }
 0x1b2   :  { %v1495_v6 = vpop.f32.mrb[3].mxu1 }
 0x1b3   :  { %v1496_v51 = vadd.f32 %v1495_v6, %v1494_v60 }
 0x1b5   :  { %v1057_v19 = vadd.f32 %v1496_v51, %v949_v14 }
 0x1c8   :  { %v1529_v34 = vpop.f32.mrb[4].mxu0 }
 0x1c9   :  { %v1530_v55 = vpop.f32.mrb[5].mxu0 }
 0x1ca   :  { %v1531_v45 = vadd.f32 %v1530_v55, %v1529_v34 }
 0x1cc   :  { %v1225_v23 = vadd.f32 %v1531_v45, %v1057_v19 }
 0x1d1   :  { %v1564_v3 = vpop.f32.mrb[4].mxu1 }
 0x1d2   :  { %v1565_v25 = vpop.f32.mrb[5].mxu1 }
 0x1d3   :  { %v1566_v59 = vadd.f32 %v1565_v25, %v1564_v3 }
 0x1d5   :  { %v1329_v42 = vadd.f32 %v1566_v59, %v1225_v23 }
 0x1d7   :  { %v1333_v38 = vrot.slane %v1329_v42, 1 }
 0x1d9   :  { %1765 = vrcp.f32 %v1333_v38 }
 0x1e3   :  { %v1766_v21 = vpop.eup %1765 }
 0x1e4   :  { %v1336_v48 = vmul.f32 %v1766_v21, %v1329_v42 }
 0x1e6   :  { %vm1337_vm0 = vcmp.ne.f32.partialorder %v1336_v48, %v1336_v48 }
 0x1e7   :  { %v1338_v8 = vsel %vm1337_vm0, 0.0, %v1336_v48 }
 0x1e8   :  { %1339 = vst [vmem:[#allocation8] sm:$0x1] %v1338_v8 }
 0x1e9   :  { %1844 = shalt.err (!%p1841_p0)
}
 0x1ea   :  { %s1845_s5 = scalar_lea.hbm %s2496_s4, 16 }
 0x1eb   :  { %p1846_p1 = scmp.ne.s32.totalorder %s2496_s4, %s1845_s5  ;;  %p1849_p2 = scmp.lt.u32.totalorder %s1845_s5, %s2496_s4 }
 0x1ed   :  { %p1851_p3 = pnand %p1849_p2, %p1846_p1 }
 0x1ef   :  { %1854 = shalt.err (!%p1851_p3)
}
 0x1f0   :  { %1349 = dma.vmem_to_hbm [thread:$0]  %s1347_s26, 16, %s2496_s4, [#allocation4]  }
 0x1f1   :  { %1859 = dma.done.wait [#allocation4], 16  }
 0x1f2   :  { %1860 = vsyncadd [#allocation4], 4294967280 }
 0x1f3   :  { %1353 = vsyncpa [#allocation3], 1 }
 0x1f4   :  { %1354 = vsyncpa [#allocation6], 1 }
 0x1f5   :  { %1355 = vsyncpa [#allocation4], 1 }

</bundles_post_ra>
